<compile_context>
chip_gen: v7x
topology: tpu7x:2x2x1
jax: 0.10.0
libtpu: 0.0.40
codegen_flags: <defaults>
</compile_context>

<pallas_src>
import jax
import jax.numpy as jnp
from jax import lax
from jax.experimental import pallas as pl
from jax.experimental.pallas import tpu as pltpu
import numpy as np

# ---- "config" (small, synthetic) -------------------------------------------
EMB = 32          # config.emb_dim
HID = 32          # config.hidden_dim
VOCAB = 40        # vocab_size
N_EXTRA = 6       # extra_zeros width (extended vocab)
B = 2             # batch
T_P = 8           # encoder_p time steps
T_L = 8           # encoder_l time steps
T_ALL = T_P + T_L
V_EXT = VOCAB + N_EXTRA
LANES = 128
WIDE = 2 * LANES  # 256

# ---- parameter-slab row offsets (all multiples of 8 -> aligned sublanes) ----
R_GRU = 0                      # rows 0:64   [y|h] -> gi lanes 0:96 | gh lanes 128:224
R_ATT = R_GRU + EMB + HID      # 64          w_dp^T lanes 0:32 | w_dl^T lanes 32:64
R_HEAD = R_ATT + HID           # 96          vocab logits 0:40, p_gen col 40, s_t id 64:96
R_V = R_HEAD + 3 * HID         # 192         per-timestep v (v_p rows, v_l rows)
R_BIAS = R_V + T_ALL           # 208         row0: b_ih|b_hh ; row1: b_att ; row2: b_head
P_ROWS = R_BIAS + 8            # 216

# ---- activation-slab layout (B, A_ROWS, 256) --------------------------------
A_ROWS = T_ALL + 8             # 24 rows (16 encoder rows + padded vec row block)
ROW_VEC = T_ALL                # row 16: [y | h | masks]
C_EO = 0                       # lanes 0:64   block-diag [eo_p | eo_l]
C_EF = 64                      # lanes 64:96  encoder features (P rows then L rows)
C_COPY = 128                   # lanes 128:256 one-hot(ext_ids) for L rows, 0 for P rows
C_XH = 0                       # vec row lanes 0:64 = [y | h]
C_MASK = 64                    # vec row lanes 64:80 = [mask_p | mask_l]

# ---- head output lane layout -------------------------------------------------
L_PGEN_LOGIT = VOCAB           # 40
L_ST = 64                      # 64:96 s_t identity passthrough
L_PGEN = 96
L_LCOPY = 97


# ---- Pallas kernel ----------------------------------------------------------
def decoder_kernel(p_ref, act_ref, out_ref):
    f32 = jnp.float32
    bblk = act_ref.shape[0]

    enc = act_ref[:, 0:T_ALL, :]                          # (bblk, T_ALL, 256)
    vec = act_ref[:, ROW_VEC:ROW_VEC + 1, :][:, 0, :]     # (bblk, 256)

    xh = vec[:, C_XH:C_XH + EMB + HID]                    # (bblk, 64) = [y | h]
    h = vec[:, EMB:EMB + HID]                             # (bblk, HID)
    mask_all = vec[:, C_MASK:C_MASK + T_ALL]              # (bblk, T_ALL)

    # --- fused GRU step: ONE MXU call (gi lanes 0:96, gh lanes 128:224) + one bias row
    gates = jnp.dot(xh, p_ref[R_GRU:R_GRU + EMB + HID, :],
                    preferred_element_type=f32) + p_ref[R_BIAS + 0:R_BIAS + 1, :]
    r = jax.nn.sigmoid(gates[:, 0:HID] + gates[:, LANES:LANES + HID])
    z = jax.nn.sigmoid(gates[:, HID:2 * HID] + gates[:, LANES + HID:LANES + 2 * HID])
    n = jnp.tanh(gates[:, 2 * HID:3 * HID]
                 + r * gates[:, LANES + 2 * HID:LANES + 3 * HID])
    s_t = (1.0 - z) * n + z * h                           # (bblk, HID)

    # --- both attention query projections in one 128-wide matmul
    dec = jnp.dot(s_t, p_ref[R_ATT:R_ATT + HID, 0:LANES],
                  preferred_element_type=f32) + p_ref[R_BIAS + 1:R_BIAS + 2, 0:LANES]
    dec_p = dec[:, 0:HID]
    dec_l = dec[:, HID:2 * HID]

    ef_all = enc[:, :, C_EF:C_EF + HID]                   # (bblk, T_ALL, HID)
    t3 = lax.broadcasted_iota(jnp.int32, (bblk, T_ALL, HID), 1)
    dec_all = jnp.where(t3 < T_P, dec_p[:, None, :], dec_l[:, None, :])
    e = jnp.tanh(ef_all + dec_all)                        # one EUP pass for both attns

    v_all = p_ref[R_V:R_V + T_ALL, 0:HID]                 # (T_ALL, HID)
    scores = jnp.sum(e * v_all[None, :, :], axis=-1)      # (bblk, T_ALL)

    # segmented masked softmax (shared shift cancels per segment); exact divide
    m = jnp.max(scores, axis=-1, keepdims=True)
    ex = jnp.exp(scores - m) * mask_all
    den_p = jnp.sum(ex[:, 0:T_P], axis=-1, keepdims=True)
    den_l = jnp.sum(ex[:, T_P:T_ALL], axis=-1, keepdims=True)
    lane_t = lax.broadcasted_iota(jnp.int32, (bblk, T_ALL), 1)
    # NOTE: the clamp avoids NaN for a fully-masked segment (reference would NaN).
    den_all = jnp.maximum(jnp.where(lane_t < T_P, den_p, den_l), 1e-30)
    ad = ex / den_all                                     # (bblk, T_ALL)

    # --- ONE batched MXU call over the full 256-lane slab:
    #     lanes 0:64 -> [c_p | c_l], lanes 128:256 -> raw copy distribution
    ctx = jnp.einsum('bqt,btk->bqk', ad[:, None, :], enc,
                     preferred_element_type=f32)[:, 0, :]  # (bblk, 256)
    c_cat = ctx[:, 0:2 * HID]
    raw_copy = ctx[:, C_COPY:C_COPY + LANES]               # (bblk, 128)

    # --- fused output head: vocab logits 0:40, p_gen logit col 40, s_t id 64:96
    head_in = jnp.concatenate([s_t, c_cat], axis=-1)       # (bblk, 3*HID)
    head = jnp.dot(head_in, p_ref[R_HEAD:R_HEAD + 3 * HID, 0:LANES],
                   preferred_element_type=f32) + p_ref[R_BIAS + 2:R_BIAS + 3, 0:LANES]

    # full-128-lane masked vocab softmax (exact divide -> rows sum to 1)
    lane = lax.broadcasted_iota(jnp.int32, (bblk, LANES), 1)
    masked_logits = jnp.where(lane < VOCAB, head, -1e30)
    lmax = jnp.max(masked_logits, axis=-1, keepdims=True)
    el = jnp.exp(masked_logits - lmax)                     # exact 0 beyond VOCAB
    vocab_pad = el / jnp.sum(el, axis=-1, keepdims=True)   # (bblk, 128)

    p_gen = jax.nn.sigmoid(head[:, L_PGEN_LOGIT:L_PGEN_LOGIT + 1])  # (bblk, 1)
    l_copy = 1.0 - p_gen

    # slot 0: final extended-vocab distribution (padded to 128 lanes)
    out_ref[0] = p_gen * vocab_pad + l_copy * raw_copy

    # slot 1: misc row (s_t already sits at lanes 64:96 via the identity block)
    misc = jnp.where(lane == L_PGEN, p_gen, head)
    misc = jnp.where(lane == L_LCOPY, l_copy, misc)
    out_ref[1] = misc


# ---- host-side packing (layout glue only) ------------------------------------
def pack_params(P):
    (w_ih, w_hh, b_ih, b_hh, w_dp, b_dp, v_p, w_dl, b_dl, v_l,
     w_out, b_out, w_pg, b_pg) = [np.asarray(a, np.float32) for a in P]
    W = np.zeros((P_ROWS, WIDE), np.float32)
    # fused GRU weight: rows 0:32 (y) -> gi lanes 0:96 ; rows 32:64 (h) -> gh lanes 128:224
    W[R_GRU:R_GRU + EMB, 0:3 * HID] = w_ih.T
    W[R_GRU + EMB:R_GRU + EMB + HID, LANES:LANES + 3 * HID] = w_hh.T
    # attention query projections
    W[R_ATT:R_ATT + HID, 0:HID] = w_dp.T
    W[R_ATT:R_ATT + HID, HID:2 * HID] = w_dl.T
    # fused head: input [s_t | c_p | c_l]
    W[R_HEAD:R_HEAD + HID, 0:VOCAB] = w_out[:, 0:HID].T
    W[R_HEAD + HID:R_HEAD + 2 * HID, 0:VOCAB] = w_out[:, HID:2 * HID].T
    W[R_HEAD:R_HEAD + 3 * HID, VOCAB] = w_pg[0, :]
    W[R_HEAD:R_HEAD + HID, L_ST:L_ST + HID] = np.eye(HID, dtype=np.float32)
    # per-timestep v vectors (v_p for the P segment, v_l for the L segment)
    W[R_V:R_V + T_P, 0:HID] = v_p[0]
    W[R_V + T_P:R_V + T_ALL, 0:HID] = v_l[0]
    # bias rows
    W[R_BIAS + 0, 0:3 * HID] = b_ih
    W[R_BIAS + 0, LANES:LANES + 3 * HID] = b_hh
    W[R_BIAS + 1, 0:HID] = b_dp
    W[R_BIAS + 1, HID:2 * HID] = b_dl
    W[R_BIAS + 2, 0:VOCAB] = b_out
    W[R_BIAS + 2, VOCAB] = b_pg[0]
    return jnp.asarray(W)


def pack_activations(y, h0, eo_p, ef_p, m_p, eo_l, ef_l, m_l, ids):
    y, h0, eo_p, ef_p, m_p, eo_l, ef_l, m_l = [
        np.asarray(a, np.float32) for a in (y, h0, eo_p, ef_p, m_p, eo_l, ef_l, m_l)]
    ids = np.asarray(ids)
    A = np.zeros((B, A_ROWS, WIDE), np.float32)
    # block-diagonal encoder outputs for the single context matmul
    A[:, 0:T_P, 0:HID] = eo_p
    A[:, T_P:T_ALL, HID:2 * HID] = eo_l
    # encoder features (shared lane block, P rows then L rows)
    A[:, 0:T_P, C_EF:C_EF + HID] = ef_p
    A[:, T_P:T_ALL, C_EF:C_EF + HID] = ef_l
    # one-hot copy matrix for the L segment (zero for P rows)
    onehot = (ids[:, :, None] == np.arange(LANES)[None, None, :]).astype(np.float32)
    A[:, T_P:T_ALL, C_COPY:C_COPY + LANES] = onehot
    # vec row: [y | h | mask_p | mask_l]
    A[:, ROW_VEC, 0:EMB] = y
    A[:, ROW_VEC, EMB:EMB + HID] = h0
    A[:, ROW_VEC, C_MASK:C_MASK + T_P] = m_p
    A[:, ROW_VEC, C_MASK + T_P:C_MASK + T_ALL] = m_l
    return jnp.asarray(A)


def decoder_forward(param_slab, act_slab):
    b = act_slab.shape[0]
    bblk = b   # one block here; larger batches -> more grid steps / both TCs on v7x
    out = pl.pallas_call(
        decoder_kernel,
        out_shape=jax.ShapeDtypeStruct((2, b, LANES), jnp.float32),
        grid=(pl.cdiv(b, bblk),),
        in_specs=[
            pl.BlockSpec((P_ROWS, WIDE), lambda i: (0, 0)),        # params stay resident
            pl.BlockSpec((bblk, A_ROWS, WIDE), lambda i: (i, 0, 0)),
        ],
        out_specs=pl.BlockSpec((2, bblk, LANES), lambda i: (0, i, 0)),
        compiler_params=pltpu.CompilerParams(
            dimension_semantics=("parallel",)),
    )(param_slab, act_slab)
    final_dist = out[0, :, :V_EXT]
    s_t = out[1, :, L_ST:L_ST + HID]
    p_gen = out[1, :, L_PGEN:L_PGEN + 1]
    l_copy = out[1, :, L_LCOPY:L_LCOPY + 1]
    return final_dist, s_t, p_gen, l_copy


# ---- pure-JAX reference (mirrors the PyTorch forward exactly) ----------------
def reference_forward(P, D):
    (w_ih, w_hh, b_ih, b_hh, w_dp, b_dp, v_p, w_dl, b_dl, v_l,
     w_out, b_out, w_pg, b_pg) = P
    (y, h0, eo_p, ef_p, m_p, eo_l, ef_l, m_l, ids) = D

    gi = y @ w_ih.T + b_ih
    gh = h0 @ w_hh.T + b_hh
    r = jax.nn.sigmoid(gi[:, :HID] + gh[:, :HID])
    z = jax.nn.sigmoid(gi[:, HID:2 * HID] + gh[:, HID:2 * HID])
    n = jnp.tanh(gi[:, 2 * HID:] + r * gh[:, 2 * HID:])
    s_t = (1 - z) * n + z * h0

    def attend(w, b, v, eo, ef, m):
        dec = s_t @ w.T + b
        e = jnp.tanh(ef + dec[:, None, :])
        sc = jnp.einsum('bth,h->bt', e, v[0])
        sm = jax.nn.softmax(sc, axis=-1)
        ad_ = sm * m
        ad = ad_ / jnp.sum(ad_, axis=-1, keepdims=True)
        c = jnp.einsum('bt,bth->bh', ad, eo)
        return c, ad

    c_p, _ = attend(w_dp, b_dp, v_p, eo_p, ef_p, m_p)
    c_l, ad_l = attend(w_dl, b_dl, v_l, eo_l, ef_l, m_l)

    logits = jnp.concatenate([s_t, c_p], axis=1) @ w_out.T + b_out
    vocab_dist = jax.nn.softmax(logits, axis=-1)

    pg = jax.nn.sigmoid(jnp.concatenate([s_t, c_p, c_l], 1) @ w_pg.T + b_pg)
    lc = 1 - pg

    vd_ = pg * vocab_dist
    adl_ = lc * ad_l
    vd_ext = jnp.concatenate([vd_, jnp.zeros((B, N_EXTRA), jnp.float32)], axis=1)
    final = vd_ext.at[jnp.arange(B)[:, None], ids].add(adl_)   # scatter_add on dim 1
    return final, s_t, pg, lc


if __name__ == "__main__":
    key = jax.random.PRNGKey(0)
    ks = jax.random.split(key, 24)
    u = 0.02       # ~ config.rand_unif_init_mag
    std = 1e-2     # ~ config.trunc_norm_init_std

    # parameters (deterministic synthetic init, PyTorch shapes)
    w_ih = jax.random.uniform(ks[0], (3 * HID, EMB), jnp.float32, -u, u)
    w_hh = jax.random.uniform(ks[1], (3 * HID, HID), jnp.float32, -u, u)
    b_ih = jnp.zeros((3 * HID,), jnp.float32).at[3 * HID // 4: 3 * HID // 2].set(1.0)
    b_hh = jnp.zeros((3 * HID,), jnp.float32).at[3 * HID // 4: 3 * HID // 2].set(1.0)
    w_dp = jax.random.normal(ks[2], (HID, HID), jnp.float32) * std
    b_dp = jax.random.normal(ks[3], (HID,), jnp.float32) * std
    v_p = jax.random.normal(ks[4], (1, HID), jnp.float32) * std
    w_dl = jax.random.normal(ks[5], (HID, HID), jnp.float32) * std
    b_dl = jax.random.normal(ks[6], (HID,), jnp.float32) * std
    v_l = jax.random.normal(ks[7], (1, HID), jnp.float32) * std
    w_out = jax.random.normal(ks[8], (VOCAB, 2 * HID), jnp.float32) * std
    b_out = jax.random.normal(ks[9], (VOCAB,), jnp.float32) * std
    w_pg = jax.random.normal(ks[10], (1, 3 * HID), jnp.float32) * std
    b_pg = jax.random.normal(ks[11], (1,), jnp.float32) * std

    # data
    y_embed = jax.random.normal(ks[12], (B, EMB), jnp.float32)
    s_t_1 = jax.random.normal(ks[13], (B, HID), jnp.float32)   # hidden, layer dim squeezed
    eo_p = jax.random.normal(ks[14], (B, T_P, HID), jnp.float32)
    ef_p = jax.random.normal(ks[15], (B, T_P, HID), jnp.float32)
    eo_l = jax.random.normal(ks[16], (B, T_L, HID), jnp.float32)
    ef_l = jax.random.normal(ks[17], (B, T_L, HID), jnp.float32)
    m_p = jnp.ones((B, T_P), jnp.float32).at[1, 6:].set(0.0)
    m_l = jnp.ones((B, T_L), jnp.float32).at[1, 5:].set(0.0)
    ext_ids = jax.random.randint(ks[18], (B, T_L), 0, V_EXT).astype(jnp.int32)

    ref_params = (w_ih, w_hh, b_ih, b_hh, w_dp, b_dp, v_p, w_dl, b_dl, v_l,
                  w_out, b_out, w_pg, b_pg)
    ref_data = (y_embed, s_t_1, eo_p, ef_p, m_p, eo_l, ef_l, m_l, ext_ids)

    # host-side packing into the two lane-dense kernel slabs (layout glue only)
    param_slab = pack_params(ref_params)
    act_slab = pack_activations(y_embed, s_t_1, eo_p, ef_p, m_p,
                                eo_l, ef_l, m_l, ext_ids)

    final_dist, s_t, p_gen, l_copy = jax.block_until_ready(
        decoder_forward(param_slab, act_slab))
    ref_final, ref_s_t, ref_pg, ref_lc = jax.block_until_ready(
        reference_forward(ref_params, ref_data))

    # s_t goes through f32 matmuls only (incl. the identity passthrough column)
    np.testing.assert_allclose(np.asarray(s_t), np.asarray(ref_s_t),
                               rtol=2e-4, atol=1e-5)
    np.testing.assert_allclose(np.asarray(final_dist), np.asarray(ref_final),
                               rtol=1e-3, atol=1e-4)
    np.testing.assert_allclose(np.asarray(p_gen), np.asarray(ref_pg),
                               rtol=1e-3, atol=1e-4)
    np.testing.assert_allclose(np.asarray(l_copy), np.asarray(ref_lc),
                               rtol=1e-3, atol=1e-4)
    # sanity: exact divides -> final_dist rows sum to ~1
    assert np.allclose(np.asarray(final_dist).sum(-1), 1.0, atol=1e-3)

    print("KERNEL_OK")
</pallas_src>

<mosaic_0001>
module attributes {stable_mosaic.version = 11 : i64} {
  func.func @decoder_kernel(%arg0: i32, %arg1: memref<216x256xf32, #tpu.memory_space<vmem>>, %arg2: memref<2x24x256xf32, #tpu.memory_space<vmem>>, %arg3: memref<2x2x128xf32, #tpu.memory_space<vmem>>) attributes {dimension_semantics = [#tpu.dimension_semantics<parallel>], iteration_bounds = array<i64: 1>, scalar_prefetch = 0 : i64, scratch_operands = 0 : i64, tpu.core_type = #tpu.core_type<tc>, window_params = [{pipeline_mode = #tpu.pipeline_mode<synchronous>, transform_indices = @transform_0, window_bounds = array<i64: 216, 256>}, {transform_indices = @transform_1, window_bounds = array<i64: 2, 24, 256>}, {transform_indices = @transform_2, window_bounds = array<i64: 2, 2, 128>}]} {
    %c0 = arith.constant 0 : index
    %c0_0 = arith.constant 0 : index
    %c0_1 = arith.constant 0 : index
    %0 = vector.load %arg2[%c0, %c0_0, %c0_1] : memref<2x24x256xf32, #tpu.memory_space<vmem>>, vector<2x16x256xf32>
    %c0_2 = arith.constant 0 : index
    %c16 = arith.constant 16 : index
    %c0_3 = arith.constant 0 : index
    %1 = vector.load %arg2[%c0_2, %c16, %c0_3] : memref<2x24x256xf32, #tpu.memory_space<vmem>>, vector<2x1x256xf32>
    %2 = vector.shape_cast %1 : vector<2x1x256xf32> to vector<2x256xf32>
    %3 = vector.extract_strided_slice %2 {offsets = [0, 0], sizes = [2, 64], strides = [1, 1]} : vector<2x256xf32> to vector<2x64xf32>
    %4 = vector.extract_strided_slice %2 {offsets = [0, 32], sizes = [2, 32], strides = [1, 1]} : vector<2x256xf32> to vector<2x32xf32>
    %5 = vector.extract_strided_slice %2 {offsets = [0, 64], sizes = [2, 16], strides = [1, 1]} : vector<2x256xf32> to vector<2x16xf32>
    %c0_4 = arith.constant 0 : index
    %c0_5 = arith.constant 0 : index
    %6 = vector.load %arg1[%c0_4, %c0_5] : memref<216x256xf32, #tpu.memory_space<vmem>>, vector<64x256xf32>
    %cst = arith.constant dense<0.000000e+00> : vector<2x256xf32>
    %7 = tpu.matmul %3, %6, %cst {dimension_numbers = #tpu.dot_dimension_numbers<[1], [0], [0], [1], [0, 0, 1, 1], [], []>} : vector<2x64xf32>, vector<64x256xf32>, vector<2x256xf32> -> vector<2x256xf32>
    %c208 = arith.constant 208 : index
    %c0_6 = arith.constant 0 : index
    %8 = vector.load %arg1[%c208, %c0_6] : memref<216x256xf32, #tpu.memory_space<vmem>>, vector<1x256xf32>
    %9 = vector.broadcast %8 : vector<1x256xf32> to vector<2x256xf32>
    %10 = arith.addf %7, %9 : vector<2x256xf32>
    %11 = vector.extract_strided_slice %10 {offsets = [0, 0], sizes = [2, 32], strides = [1, 1]} : vector<2x256xf32> to vector<2x32xf32>
    %12 = vector.extract_strided_slice %10 {offsets = [0, 128], sizes = [2, 32], strides = [1, 1]} : vector<2x256xf32> to vector<2x32xf32>
    %13 = arith.addf %11, %12 : vector<2x32xf32>
    %14 = arith.negf %13 : vector<2x32xf32>
    %15 = math.exp %14 : vector<2x32xf32>
    %cst_7 = arith.constant 1.000000e+00 : f32
    %16 = vector.broadcast %cst_7 : f32 to vector<2x32xf32>
    %17 = arith.addf %16, %15 : vector<2x32xf32>
    %18 = arith.divf %16, %17 : vector<2x32xf32>
    %19 = vector.extract_strided_slice %10 {offsets = [0, 32], sizes = [2, 32], strides = [1, 1]} : vector<2x256xf32> to vector<2x32xf32>
    %20 = vector.extract_strided_slice %10 {offsets = [0, 160], sizes = [2, 32], strides = [1, 1]} : vector<2x256xf32> to vector<2x32xf32>
    %21 = arith.addf %19, %20 : vector<2x32xf32>
    %22 = arith.negf %21 : vector<2x32xf32>
    %23 = math.exp %22 : vector<2x32xf32>
    %cst_8 = arith.constant 1.000000e+00 : f32
    %24 = vector.broadcast %cst_8 : f32 to vector<2x32xf32>
    %25 = arith.addf %24, %23 : vector<2x32xf32>
    %26 = arith.divf %24, %25 : vector<2x32xf32>
    %27 = vector.extract_strided_slice %10 {offsets = [0, 64], sizes = [2, 32], strides = [1, 1]} : vector<2x256xf32> to vector<2x32xf32>
    %28 = vector.extract_strided_slice %10 {offsets = [0, 192], sizes = [2, 32], strides = [1, 1]} : vector<2x256xf32> to vector<2x32xf32>
    %29 = arith.mulf %18, %28 : vector<2x32xf32>
    %30 = arith.addf %27, %29 : vector<2x32xf32>
    %31 = math.tanh %30 : vector<2x32xf32>
    %cst_9 = arith.constant 1.000000e+00 : f32
    %32 = vector.broadcast %cst_9 : f32 to vector<2x32xf32>
    %33 = arith.subf %32, %26 : vector<2x32xf32>
    %34 = arith.mulf %33, %31 : vector<2x32xf32>
    %35 = arith.mulf %26, %4 : vector<2x32xf32>
    %36 = arith.addf %34, %35 : vector<2x32xf32>
    %c64 = arith.constant 64 : index
    %c0_10 = arith.constant 0 : index
    %37 = vector.load %arg1[%c64, %c0_10] : memref<216x256xf32, #tpu.memory_space<vmem>>, vector<32x128xf32>
    %cst_11 = arith.constant dense<0.000000e+00> : vector<2x128xf32>
    %38 = tpu.matmul %36, %37, %cst_11 {dimension_numbers = #tpu.dot_dimension_numbers<[1], [0], [0], [1], [0, 0, 1, 1], [], []>} : vector<2x32xf32>, vector<32x128xf32>, vector<2x128xf32> -> vector<2x128xf32>
    %c209 = arith.constant 209 : index
    %c0_12 = arith.constant 0 : index
    %39 = vector.load %arg1[%c209, %c0_12] : memref<216x256xf32, #tpu.memory_space<vmem>>, vector<1x128xf32>
    %40 = vector.broadcast %39 : vector<1x128xf32> to vector<2x128xf32>
    %41 = arith.addf %38, %40 : vector<2x128xf32>
    %42 = vector.extract_strided_slice %41 {offsets = [0, 0], sizes = [2, 32], strides = [1, 1]} : vector<2x128xf32> to vector<2x32xf32>
    %43 = vector.extract_strided_slice %41 {offsets = [0, 32], sizes = [2, 32], strides = [1, 1]} : vector<2x128xf32> to vector<2x32xf32>
    %44 = vector.extract_strided_slice %0 {offsets = [0, 0, 64], sizes = [2, 16, 32], strides = [1, 1, 1]} : vector<2x16x256xf32> to vector<2x16x32xf32>
    %45 = tpu.iota {dimensions = array<i32: 1>} : vector<2x16x32xi32>
    %c8_i32 = arith.constant 8 : i32
    %46 = vector.broadcast %c8_i32 : i32 to vector<2x16x32xi32>
    %47 = arith.cmpi slt, %45, %46 : vector<2x16x32xi32>
    %48 = vector.shape_cast %42 : vector<2x32xf32> to vector<2x1x32xf32>
    %49 = vector.shape_cast %43 : vector<2x32xf32> to vector<2x1x32xf32>
    %50 = vector.shape_cast %48 : vector<2x1x32xf32> to vector<2x1x32xf32>
    %51 = vector.broadcast %50 : vector<2x1x32xf32> to vector<2x16x32xf32>
    %52 = vector.shape_cast %49 : vector<2x1x32xf32> to vector<2x1x32xf32>
    %53 = vector.broadcast %52 : vector<2x1x32xf32> to vector<2x16x32xf32>
    %54 = arith.select %47, %51, %53 : vector<2x16x32xi1>, vector<2x16x32xf32>
    %55 = arith.addf %44, %54 : vector<2x16x32xf32>
    %56 = math.tanh %55 : vector<2x16x32xf32>
    %c192 = arith.constant 192 : index
    %c0_13 = arith.constant 0 : index
    %57 = vector.load %arg1[%c192, %c0_13] : memref<216x256xf32, #tpu.memory_space<vmem>>, vector<16x32xf32>
    %58 = vector.shape_cast %57 : vector<16x32xf32> to vector<1x16x32xf32>
    %59 = vector.broadcast %58 : vector<1x16x32xf32> to vector<2x16x32xf32>
    %60 = arith.mulf %56, %59 : vector<2x16x32xf32>
    %cst_14 = arith.constant dense<0.000000e+00> : vector<2x16xf32>
    %61 = vector.multi_reduction <add>, %60, %cst_14 [2] : vector<2x16x32xf32> to vector<2x16xf32>
    %cst_15 = arith.constant dense<0xFF800000> : vector<2xf32>
    %62 = vector.multi_reduction <maximumf>, %61, %cst_15 [1] : vector<2x16xf32> to vector<2xf32>
    %63 = vector.shape_cast %62 : vector<2xf32> to vector<2x1xf32>
    %64 = vector.broadcast %63 : vector<2x1xf32> to vector<2x16xf32>
    %65 = arith.subf %61, %64 : vector<2x16xf32>
    %66 = math.exp %65 : vector<2x16xf32>
    %67 = arith.mulf %66, %5 : vector<2x16xf32>
    %68 = vector.extract_strided_slice %67 {offsets = [0, 0], sizes = [2, 8], strides = [1, 1]} : vector<2x16xf32> to vector<2x8xf32>
    %cst_16 = arith.constant dense<0.000000e+00> : vector<2xf32>
    %69 = vector.multi_reduction <add>, %68, %cst_16 [1] : vector<2x8xf32> to vector<2xf32>
    %70 = vector.shape_cast %69 : vector<2xf32> to vector<2x1xf32>
    %71 = vector.extract_strided_slice %67 {offsets = [0, 8], sizes = [2, 8], strides = [1, 1]} : vector<2x16xf32> to vector<2x8xf32>
    %cst_17 = arith.constant dense<0.000000e+00> : vector<2xf32>
    %72 = vector.multi_reduction <add>, %71, %cst_17 [1] : vector<2x8xf32> to vector<2xf32>
    %73 = vector.shape_cast %72 : vector<2xf32> to vector<2x1xf32>
    %74 = tpu.iota {dimensions = array<i32: 1>} : vector<2x16xi32>
    %c8_i32_18 = arith.constant 8 : i32
    %75 = vector.broadcast %c8_i32_18 : i32 to vector<2x16xi32>
    %76 = arith.cmpi slt, %74, %75 : vector<2x16xi32>
    %77 = vector.shape_cast %70 : vector<2x1xf32> to vector<2x1xf32>
    %78 = vector.broadcast %77 : vector<2x1xf32> to vector<2x16xf32>
    %79 = vector.shape_cast %73 : vector<2x1xf32> to vector<2x1xf32>
    %80 = vector.broadcast %79 : vector<2x1xf32> to vector<2x16xf32>
    %81 = arith.select %76, %78, %80 : vector<2x16xi1>, vector<2x16xf32>
    %cst_19 = arith.constant 1.000000e-30 : f32
    %82 = vector.broadcast %cst_19 : f32 to vector<2x16xf32>
    %83 = arith.maximumf %81, %82 : vector<2x16xf32>
    %84 = arith.divf %67, %83 : vector<2x16xf32>
    %85 = vector.shape_cast %84 : vector<2x16xf32> to vector<2x1x16xf32>
    "tpu.trace_start"() <{level = 10 : i32, message = "bqt,btk->bqk"}> : () -> ()
    %cst_20 = arith.constant dense<0.000000e+00> : vector<2x1x256xf32>
    %86 = tpu.matmul %85, %0, %cst_20 {dimension_numbers = #tpu.dot_dimension_numbers<[2], [1], [1], [2], [0, 0, 0, 1, 1, 2], [0], [0]>} : vector<2x1x16xf32>, vector<2x16x256xf32>, vector<2x1x256xf32> -> vector<2x1x256xf32>
    "tpu.trace_stop"() : () -> ()
    %87 = vector.shape_cast %86 : vector<2x1x256xf32> to vector<2x256xf32>
    %88 = vector.extract_strided_slice %87 {offsets = [0, 0], sizes = [2, 64], strides = [1, 1]} : vector<2x256xf32> to vector<2x64xf32>
    %89 = vector.extract_strided_slice %87 {offsets = [0, 128], sizes = [2, 128], strides = [1, 1]} : vector<2x256xf32> to vector<2x128xf32>
    %90 = tpu.concatenate %36, %88 in 1 : vector<2x32xf32>, vector<2x64xf32> -> vector<2x96xf32>
    %c96 = arith.constant 96 : index
    %c0_21 = arith.constant 0 : index
    %91 = vector.load %arg1[%c96, %c0_21] : memref<216x256xf32, #tpu.memory_space<vmem>>, vector<96x128xf32>
    %cst_22 = arith.constant dense<0.000000e+00> : vector<2x128xf32>
    %92 = tpu.matmul %90, %91, %cst_22 {dimension_numbers = #tpu.dot_dimension_numbers<[1], [0], [0], [1], [0, 0, 1, 1], [], []>} : vector<2x96xf32>, vector<96x128xf32>, vector<2x128xf32> -> vector<2x128xf32>
    %c210 = arith.constant 210 : index
    %c0_23 = arith.constant 0 : index
    %93 = vector.load %arg1[%c210, %c0_23] : memref<216x256xf32, #tpu.memory_space<vmem>>, vector<1x128xf32>
    %94 = vector.broadcast %93 : vector<1x128xf32> to vector<2x128xf32>
    %95 = arith.addf %92, %94 : vector<2x128xf32>
    %96 = tpu.iota {dimensions = array<i32: 1>} : vector<2x128xi32>
    %c40_i32 = arith.constant 40 : i32
    %97 = vector.broadcast %c40_i32 : i32 to vector<2x128xi32>
    %98 = arith.cmpi slt, %96, %97 : vector<2x128xi32>
    %cst_24 = arith.constant -1.000000e+30 : f32
    %99 = vector.broadcast %cst_24 : f32 to vector<2x128xf32>
    %100 = arith.select %98, %95, %99 : vector<2x128xi1>, vector<2x128xf32>
    %cst_25 = arith.constant dense<0xFF800000> : vector<2xf32>
    %101 = vector.multi_reduction <maximumf>, %100, %cst_25 [1] : vector<2x128xf32> to vector<2xf32>
    %102 = vector.shape_cast %101 : vector<2xf32> to vector<2x1xf32>
    %103 = vector.broadcast %102 : vector<2x1xf32> to vector<2x128xf32>
    %104 = arith.subf %100, %103 : vector<2x128xf32>
    %105 = math.exp %104 : vector<2x128xf32>
    %cst_26 = arith.constant dense<0.000000e+00> : vector<2xf32>
    %106 = vector.multi_reduction <add>, %105, %cst_26 [1] : vector<2x128xf32> to vector<2xf32>
    %107 = vector.shape_cast %106 : vector<2xf32> to vector<2x1xf32>
    %108 = vector.broadcast %107 : vector<2x1xf32> to vector<2x128xf32>
    %109 = arith.divf %105, %108 : vector<2x128xf32>
    %110 = vector.extract_strided_slice %95 {offsets = [0, 40], sizes = [2, 1], strides = [1, 1]} : vector<2x128xf32> to vector<2x1xf32>
    %111 = arith.negf %110 : vector<2x1xf32>
    %112 = math.exp %111 : vector<2x1xf32>
    %cst_27 = arith.constant 1.000000e+00 : f32
    %113 = vector.broadcast %cst_27 : f32 to vector<2x1xf32>
    %114 = arith.addf %113, %112 : vector<2x1xf32>
    %115 = arith.divf %113, %114 : vector<2x1xf32>
    %cst_28 = arith.constant 1.000000e+00 : f32
    %116 = vector.broadcast %cst_28 : f32 to vector<2x1xf32>
    %117 = arith.subf %116, %115 : vector<2x1xf32>
    %118 = vector.broadcast %115 : vector<2x1xf32> to vector<2x128xf32>
    %119 = arith.mulf %118, %109 : vector<2x128xf32>
    %120 = vector.broadcast %117 : vector<2x1xf32> to vector<2x128xf32>
    %121 = arith.mulf %120, %89 : vector<2x128xf32>
    %122 = arith.addf %119, %121 : vector<2x128xf32>
    %c0_29 = arith.constant 0 : index
    %c0_30 = arith.constant 0 : index
    %c0_31 = arith.constant 0 : index
    %123 = vector.load %arg3[%c0_29, %c0_30, %c0_31] : memref<2x2x128xf32, #tpu.memory_space<vmem>>, vector<1x2x128xf32>
    %124 = vector.shape_cast %123 : vector<1x2x128xf32> to vector<2x128xf32>
    %125 = vector.shape_cast %122 : vector<2x128xf32> to vector<1x2x128xf32>
    tpu.vector_store %arg3[%c0_29, %c0_30, %c0_31], %125 {strides = array<i32>} : memref<2x2x128xf32, #tpu.memory_space<vmem>>, vector<1x2x128xf32>,
    %c96_i32 = arith.constant 96 : i32
    %126 = vector.broadcast %c96_i32 : i32 to vector<2x128xi32>
    %127 = arith.cmpi eq, %96, %126 : vector<2x128xi32>
    %128 = vector.shape_cast %115 : vector<2x1xf32> to vector<2x1xf32>
    %129 = vector.broadcast %128 : vector<2x1xf32> to vector<2x128xf32>
    %130 = arith.select %127, %129, %95 : vector<2x128xi1>, vector<2x128xf32>
    %c97_i32 = arith.constant 97 : i32
    %131 = vector.broadcast %c97_i32 : i32 to vector<2x128xi32>
    %132 = arith.cmpi eq, %96, %131 : vector<2x128xi32>
    %133 = vector.shape_cast %117 : vector<2x1xf32> to vector<2x1xf32>
    %134 = vector.broadcast %133 : vector<2x1xf32> to vector<2x128xf32>
    %135 = arith.select %132, %134, %130 : vector<2x128xi1>, vector<2x128xf32>
    %c1 = arith.constant 1 : index
    %c0_32 = arith.constant 0 : index
    %c0_33 = arith.constant 0 : index
    %136 = vector.load %arg3[%c1, %c0_32, %c0_33] : memref<2x2x128xf32, #tpu.memory_space<vmem>>, vector<1x2x128xf32>
    %137 = vector.shape_cast %136 : vector<1x2x128xf32> to vector<2x128xf32>
    %138 = vector.shape_cast %135 : vector<2x128xf32> to vector<1x2x128xf32>
    tpu.vector_store %arg3[%c1, %c0_32, %c0_33], %138 {strides = array<i32>} : memref<2x2x128xf32, #tpu.memory_space<vmem>>, vector<1x2x128xf32>,
    return
  }
  func.func @transform_0(%arg0: i32) -> (i32, i32) {
    %c0_i32 = arith.constant 0 : i32
    %c0_i32_0 = arith.constant 0 : i32
    %c0_i32_1 = arith.constant 0 : i32
    return %c0_i32, %c0_i32_0 : i32, i32
  }
  func.func @transform_1(%arg0: i32) -> (i32, i32, i32) {
    %c0_i32 = arith.constant 0 : i32
    %c0_i32_0 = arith.constant 0 : i32
    %c0_i32_1 = arith.constant 0 : i32
    return %arg0, %c0_i32, %c0_i32_0 : i32, i32, i32
  }
  func.func @transform_2(%arg0: i32) -> (i32, i32, i32) {
    %c0_i32 = arith.constant 0 : i32
    %c0_i32_0 = arith.constant 0 : i32
    %c0_i32_1 = arith.constant 0 : i32
    return %c0_i32, %arg0, %c0_i32_0 : i32, i32, i32
  }
}

</mosaic_0001>

<bundles_post_ra>
// kernel: tpu_custom_call.1
= control target key start
LH: loop header
LB: loop body
LE: loop exit
PB: predicated region body
PF: predicated region fallthrough
CT: control target
= control target key end

     0   :  { %7 = vsyncpa [#allocation3], 0  ;;  %s1339_s0 = inlined_call_operand.hbm [shape: f32[216,256], index: 0, kind: input, shape index: {}]   ;;  %s1340_s1 = inlined_call_operand.hbm [shape: f32[2,24,256], index: 1, kind: input, shape index: {}]   ;;  %s1341_s2 = inlined_call_operand.hbm [shape: f32[2,2,128], index: 2, kind: output, shape index: {}]  }
   0x1   :  { %8 = vsyncpa [#allocation6], 0 }
   0x2   :  { %9 = vsyncpa [#allocation4], 0  ;;  %s1144_s9 = smov [#allocation2]   ;;  %s1072_s13 = scalar_lea.hbm %s1339_s0, 6912 }
   0x3   :  { %s15_s10 = sshll.u32 %s1144_s9, 4  ;;  %p1073_p0 = scmp.ne.s32.totalorder %s1339_s0, %s1072_s13  ;;  %s16_s10 = int_to_ptr.vmem [resolvable:$true] %s15_s10 }
   0x4   :  { %p1076_p1 = scmp.lt.u32.totalorder %s1072_s13, %s1339_s0 }
   0x6   :  { %p1078_p2 = pnand %p1076_p1, %p1073_p0 }
   0x8   :  { %1081 = shalt.err (!%p1078_p2)
}
   0x9   :  { %s1082_s18 = scalar_lea.vmem %s16_s10, 6912  ;;  %p1087_p4 = scmp.lt.s32.totalorder %s16_s10, %s16_s10 }
   0xa   :  { %p1083_p3 = scmp.ne.s32.totalorder %s16_s10, %s1082_s18  ;;  %p1088_p5 = scmp.lt.s32.totalorder %s1082_s18, %s1082_s18 }
   0xc   :  { %p1089_p6 = por %p1088_p5, %p1087_p4 }
   0xe   :  { %p1090_p7 = pnand %p1089_p6, %p1083_p3 }
  0x10   :  { %1093 = shalt.err (!%p1090_p7)
}
  0x11   :  { %s1145_s19 = smov 256   ;;  %s1146_s20 = smov 16  }
  0x12   :  { %21 = dma.hbm_to_vmem [thread:$0]  %s1339_s0, 6912, %s16_s10, [#allocation3], %s1145_s19, %s1145_s19, %s1146_s20  }
  0x13   :  { %s1147_s23 = smov [#allocation5]   ;;  %s1094_s27 = scalar_lea.hbm %s1340_s1, 1536 }
  0x14   :  { %s27_s24 = sshll.u32 %s1147_s23, 4  ;;  %p1095_p8 = scmp.ne.s32.totalorder %s1340_s1, %s1094_s27  ;;  %s28_s24 = int_to_ptr.vmem [resolvable:$true] %s27_s24 }
  0x15   :  { %p1098_p9 = scmp.lt.u32.totalorder %s1094_s27, %s1340_s1 }
  0x17   :  { %p1100_p10 = pnand %p1098_p9, %p1095_p8 }
  0x19   :  { %1103 = shalt.err (!%p1100_p10)
}
  0x1a   :  { %s1104_s4 = scalar_lea.vmem %s28_s24, 1536  ;;  %p1109_p12 = scmp.lt.s32.totalorder %s28_s24, %s28_s24 }
  0x1b   :  { %p1105_p11 = scmp.ne.s32.totalorder %s28_s24, %s1104_s4  ;;  %p1110_p13 = scmp.lt.s32.totalorder %s1104_s4, %s1104_s4 }
  0x1d   :  { %p1111_p0 = por %p1110_p13, %p1109_p12 }
  0x1f   :  { %p1112_p1 = pnand %p1111_p0, %p1105_p11 }
  0x21   :  { %1115 = shalt.err (!%p1112_p1)
}
  0x22   :  { %33 = dma.hbm_to_vmem [thread:$0]  %s1340_s1, 1536, %s28_s24, [#allocation6], %s1145_s19, %s1145_s19, %s1146_s20  }
  0x23   :  { %1138 = dma.done.wait [#allocation3], 6912  }
  0x24   :  { %1139 = vsyncadd [#allocation3], 4294960384 }
  0x25   :  { %1140 = dma.done.wait [#allocation6], 1536  }
  0x26   :  { %1141 = vsyncadd [#allocation6], 4294965760  ;;  %v1148_v0 = vmov 0.0   ;;  %v71_v1 = vlaneseq  ;;  %v1149_v2 = vmov 1966171168   ;;  %v53_v4 = vld [vmem:[#allocation2 + $0x8] sm:$0xff] }
  0x27   :  { %165 = vmatprep.mubr.f32.mxu1 %v1148_v0  ;;  %647 = vmatprep.mubr.f32.mxu0 %v1148_v0  ;;  %v85_v3 = vunpack.c.l.s4 %v1149_v2  ;;  %v55_v5 = vld [vmem:[#allocation2 + $0x18] sm:$0xff]  ;;  %v52_v6 = vld [vmem:[#allocation2] sm:$0xff]  ;;  %v54_v8 = vld [vmem:[#allocation2 + $0x10] sm:$0xff]  ;;  %vm98_vm0 = vcmask 523264   ;;  %s1150_s1 = smov 64   ;;  %v1151_v57 = vmov 0.0|0.0  }
  0x28   :  { %v967_v7 = vpack.c.bf16 %v55_v5, %v53_v4  ;;  %v57_v9 = vld [vmem:[#allocation2 + $0x28] sm:$0xff]  ;;  %v59_v10 = vld [vmem:[#allocation2 + $0x38] sm:$0xff]  ;;  %v969_v11 = vpack.c.bf16 %v54_v8, %v52_v6  ;;  %v56_v13 = vld [vmem:[#allocation2 + $0x20] sm:$0xff]  ;;  %v1201_v17 = vshrl.u32 %v71_v1, 7  ;;  %vm1152_vm1 = vmmov 0   ;;  %s1153_s6 = smov 96  }
  0x29   :  { %v971_v12 = vpack.c.bf16 %v59_v10, %v57_v9  ;;  %v58_v14 = vld [vmem:[#allocation2 + $0x30] sm:$0xff]  ;;  %v61_v15 = vld [vmem:[#allocation2 + $0x48] sm:$0xff]  ;;  %v63_v16 = vld [vmem:[#allocation2 + $0x58] sm:$0xff]  ;;  %v86_v18 = vunpack.c.0.s8 %v85_v3  ;;  %vm207_vm2 = vcmask 261120   ;;  %vm409_vm3 = vcmask 130112   ;;  %s1155_s7 = smov 32  }
  0x2a   :  { %968 = vmatprep.subr.bf16.mxu1 %v967_v7  ;;  %v973_v19 = vpack.c.bf16 %v58_v14, %v56_v13  ;;  %v975_v20 = vpack.c.bf16 %v63_v16, %v61_v15  ;;  %v60_v21 = vld [vmem:[#allocation2 + $0x40] sm:$0xff]  ;;  %v62_v22 = vld [vmem:[#allocation2 + $0x50] sm:$0xff]  ;;  %v65_v24 = vld [vmem:[#allocation2 + $0x68] sm:$0xff]  ;;  %v1215_v36 = vsub.s32 1, %v1201_v17  ;;  %v1220_v42 = vsub.s32 0, %v1201_v17  ;;  %s1157_s8 = smov [#allocation7]  }
  0x2b   :  { %970 = vmatpush1.bf16.msra.mxu1 %v969_v11  ;;  %v1203_v23 = vld [vmem:[#allocation5 + $0x20] ss:$8 sm:$0x3]  ;;  %v1205_v26 = vld [vmem:[#allocation5 + $0x50] ss:$8 sm:$0x3]  ;;  %v1210_v28 = vsub.s32 %v86_v18, %v1201_v17  ;;  %v977_v29 = vpack.c.bf16 %v62_v22, %v60_v21 }
  0x2c   :  { %972 = vmatprep.subr.bf16.mxu1 %v971_v12  ;;  %v67_v25 = vld [vmem:[#allocation2 + $0x78] sm:$0xff]  ;;  %v83_v27 = vcombine.low %v1203_v23, %v1205_v26  ;;  %v64_v31 = vld [vmem:[#allocation2 + $0x60] sm:$0xff]  ;;  %v66_v32 = vld [vmem:[#allocation2 + $0x70] sm:$0xff]  ;;  %vm420_vm4 = vcmask 1041409   ;;  %vm423_vm5 = vcmask 123904   ;;  %vm500_vm6 = vcmask 58368  }
  0x2d   :  { %v979_v30 = vpack.c.bf16 %v67_v25, %v65_v24  ;;  %v981_v34 = vpack.c.bf16 %v66_v32, %v64_v31  ;;  %v69_v37 = vld [vmem:[#allocation2 + $0x1a0] ss:$8 sm:$0x3]  ;;  %v200_v55 = vld [vmem:[#allocation2 + $0x90] sm:$0xff]  ;;  %v203_v6 = vld [vmem:[#allocation2 + $0x1a1] ss:$0 sm:$0xff] }
  0x2e   :  { %v90_v33 = vrot.slane %v83_v27, %v1210_v28  ;;  %v78_v38 = vrot.slane %v69_v37, %v1215_v36  ;;  %v74_v43 = vrot.slane %v69_v37, %v1220_v42  ;;  %v199_v54 = vld [vmem:[#allocation2 + $0x80] sm:$0xff]  ;;  %v202_v59 = vld [vmem:[#allocation2 + $0xb0] sm:$0xff]  ;;  %vm580_vm8 = vcmask 130048   ;;  %s891_s9 = sshll.u32 %s1157_s8, 4  ;;  %s892_s9 = int_to_ptr.vmem [resolvable:$true] %s891_s9 }
  0x2f   :  { %974 = vmatpush1.bf16.msra.mxu1 %v973_v19  ;;  %v201_v56 = vld [vmem:[#allocation2 + $0xa0] sm:$0xff]  ;;  %v984_v58 = vpack.c.bf16 %v200_v55, %v199_v54  ;;  %v1242_v19 = vld [vmem:[#allocation5] sm:$0xff]  ;;  %v453_v55 = vrot.slane %v1203_v23, %v1220_v42  ;;  %vm766_vm9 = vcmask 785408   ;;  %vm842_vm11 = vcmask 1041408   ;;  %s1116_s10 = scalar_lea.vmem %s892_s9, 64  ;;  %p1121_p3 = scmp.lt.s32.totalorder %s892_s9, %s892_s9 }
  0x30   :  { %976 = vmatprep.subr.bf16.mxu1 %v975_v20  ;;  %v97_v35 = vrot.slane %v90_v33, %v1210_v28  ;;  %v987_v60 = vpack.c.bf16 %v202_v59, %v201_v56  ;;  %v352_v16 = vld [vmem:[#allocation2 + $0x180] sm:$0xff]  ;;  %v353_v25 = vld [vmem:[#allocation2 + $0x190] sm:$0xff]  ;;  %v457_v56 = vrot.slane %v1205_v26, %v1220_v42  ;;  %p1117_p2 = scmp.ne.s32.totalorder %s892_s9, %s1116_s10  ;;  %p1122_p4 = scmp.lt.s32.totalorder %s1116_s10, %s1116_s10 }
  0x31   :  { %v1246_v24 = vld [vmem:[#allocation5 + $0x30] sm:$0xff] }
  0x32   :  { %p1123_p5 = por %p1122_p4, %p1121_p3 }
  0x33   :  { %978 = vmatpush1.bf16.msra.mxu1 %v977_v29 }
  0x34   :  { %980 = vmatprep.subr.bf16.mxu1 %v979_v30  ;;  %p1124_p6 = pnand %p1123_p5, %p1117_p2 }
  0x37   :  { %982 = vmatpush1.bf16.msra.mxu1 %v981_v34  ;;  %v1252_v34 = vld [vmem:[#allocation5 + $0x10] sm:$0xff] }
  0x38   :  { %983 = vmatprep.subr.bf16.mxu1 %v1151_v57 }
  0x3a   :  { %904 = vmatmul.mubr.msk.f32.vlgmr.msra.gmra.mrb[0].mxu1 %vm98_vm0, %v97_v35 }
  0x3b   :  { %937 = vmatprep.mubr.msk.f32.mxu1 %vm1152_vm1, %v1148_v0  ;;  %985 = vmatpush3.bf16.msra.mxu1 %v984_v58  ;;  %v1269_v58 = vand.u32 127, %v71_v1 }
  0x3c   :  { %986 = vmatprep.subr.bf16.mxu1 %v1151_v57 }
  0x3d   :  { %v1277_v23 = vsub.s32 %v1269_v58, %v1201_v17  ;;  %vm525_vm7 = vcmp.lt.s32.totalorder %v1269_v58, 8  ;;  %vm840_vm10 = vcmp.lt.s32.totalorder %v1269_v58, 40  ;;  %vm880_vm12 = vcmp.eq.s32.totalorder %v1269_v58, 96 }
  0x3e   :  { %vm882_vm13 = vcmp.eq.s32.totalorder %v1269_v58, 97 }
  0x3f   :  { %988 = vmatpush3.bf16.msra.mxu1 %v987_v60  ;;  %v404_v60 = vadd.s32 4294967288, %v1269_v58 }
 0x10d   :  { %v167_v39 = vpop.f32.mrb[0].mxu1 }
 0x10e   :  { %v169_v40 = vpop.f32.mrb[1].mxu1  ;;  %v168_v44 = vadd.f32 %v167_v39, %v74_v43 }
 0x10f   :  { %v170_v41 = vadd.f32 %v169_v40, %v78_v38  ;;  %v1255_v38 = vld [vmem:[#allocation5 + $0x40] sm:$0xff] }
 0x111   :  { %180 = vrot.lane.b32.xlu0 %v170_v41, %s1150_s1  ;;  %v172_v45 = vadd.f32 %v170_v41, %v168_v44 }
 0x113   :  { %v905_v46 = vmul.f32 -1.442695, %v172_v45 }
 0x115   :  { %1034 = vpow2.f32 %v905_v46 }
 0x11f   :  { %v1035_v47 = vpop.eup %1034 }
 0x120   :  { %v176_v48 = vadd.f32 1.0, %v1035_v47 }
 0x122   :  { %1036 = vrcp.f32 %v176_v48 }
 0x12c   :  { %v1037_v49 = vpop.eup %1036 }
 0x12d   :  { %v190_v62 = vsub.f32 1.0, %v1037_v49  ;;  %v197_v2 = vmul.f32 %v1037_v49, %v97_v35 }
 0x183   :  { %v181_v50 = vpop.permute.xlu0 %180 }
 0x184   :  { %v183_v51 = vmul.f32 %v1037_v49, %v181_v50 }
 0x186   :  { %185 = vrot.lane.b32.xlu0 %v183_v51, %s1150_s1 }
 0x1f8   :  { %v186_v52 = vpop.permute.xlu0 %185 }
 0x1f9   :  { %v188_v53 = vadd.f32 %v186_v52, %v168_v44 }
 0x1fb   :  { %1038 = vtanh.f32 %v188_v53 }
 0x205   :  { %v1039_v61 = vpop.eup %1038 }
 0x206   :  { %192 = vrot.lane.b32.xlu1 %v1039_v61, %s1153_s6  ;;  %v1273_v61 = vsub.s32 %v404_v60, %v1201_v17 }
 0x278   :  { %v193_v63 = vpop.permute.xlu1 %192 }
 0x279   :  { %v195_v3 = vmul.f32 %v193_v63, %v190_v62 }
 0x27b   :  { %v198_v4 = vadd.f32 %v197_v2, %v195_v3 }
 0x27d   :  { %205 = vrot.lane.b32.xlu1 %v198_v4, %s1153_s6 }
 0x2ef   :  { %v1228_v5 = vpop.permute.xlu1 %205 }
 0x2f0   :  { %938 = vmatmul.mubr.msk.f32.vlgmr.msra.gmra.mrb[2].mxu1 %vm207_vm2, %v1228_v5 }
 0x2f1   :  { %737 = vmatprep.mubr.f32.mxu1 %v1148_v0 }
 0x3c3   :  { %v276_v7 = vpop.f32.mrb[2].mxu1 }
 0x3c4   :  { %v277_v8 = vadd.f32 %v276_v7, %v203_v6  ;;  %v939_v9 = vpop.f32.mrb[3].mxu1 }
 0x3c5   :  { %v1154_v9 = vmov 0  }
 0x3c6   :  { %v292_v10 = vrot.slane %v277_v8, %v1210_v28  ;;  %1031 = vset.pattern.permute.xlu0 %v1154_v9  ;;  %1030 = vset.pattern.permute.xlu1 %v1154_v9 }
 0x3c8   :  { %v293_v11 = vcombine.high %v292_v10, %v292_v10  ;;  %v300_v12 = vrot.slane %v292_v10, %v1210_v28 }
 0x3ca   :  { %v311_v13 = vrot.slane %v300_v12, %v1220_v42  ;;  %v307_v14 = vrot.slane %v293_v11, %v1210_v28 }
 0x3cc   :  { %318 = vrot.lane.b32.xlu0 %v311_v13, %s1153_s6  ;;  %v315_v15 = vrot.slane %v307_v14, %v1220_v42 }
 0x3ce   :  { %320 = vrot.lane.b32.xlu1 %v315_v15, %s1153_s6 }
 0x3d0   :  { %332 = vrot.lane.b32.xlu0 %v311_v13, %s1150_s1 }
 0x3d4   :  { %336 = vrot.lane.b32.xlu0 %v315_v15, %s1150_s1 }
 0x3d8   :  { %356 = vrot.lane.b32.xlu0 %v352_v16, %s1150_s1 }
 0x43e   :  { %v319_v18 = vpop.permute.xlu0 %318 }
 0x43f   :  { %334 = vrot.lane.b32.xlu1 %v319_v18, %s1150_s1 }
 0x440   :  { %v321_v20 = vpop.permute.xlu1 %320 }
 0x442   :  { %v333_v21 = vpop.permute.xlu0 %332 }
 0x443   :  { %v344_v22 = vadd.f32 %v333_v21, %v1242_v19  ;;  %338 = vrot.lane.b32.xlu1 %v321_v20, %s1150_s1 }
 0x445   :  { %1040 = vtanh.f32 %v344_v22 }
 0x446   :  { %v337_v27 = vpop.permute.xlu0 %336 }
 0x447   :  { %v346_v28 = vadd.f32 %v337_v27, %v1246_v24  ;;  %358 = vrot.lane.b32.xlu1 %v353_v25, %s1150_s1 }
 0x449   :  { %1042 = vtanh.f32 %v346_v28 }
 0x44a   :  { %v357_v29 = vpop.permute.xlu0 %356 }
 0x44f   :  { %v1041_v30 = vpop.eup %1040 }
 0x450   :  { %v362_v31 = vmul.f32 %v1041_v30, %v357_v29 }
 0x452   :  { %370 = vrot.lane.b32.xlu0 %v362_v31, %s1150_s1 }
 0x453   :  { %v1043_v32 = vpop.eup %1042 }
 0x454   :  { %v364_v33 = vmul.f32 %v1043_v32, %v357_v29 }
 0x456   :  { %374 = vrot.lane.b32.xlu0 %v364_v33, %s1150_s1 }
 0x4b1   :  { %v335_v35 = vpop.permute.xlu1 %334 }
 0x4b2   :  { %v345_v37 = vadd.f32 %v335_v35, %v1252_v34 }
 0x4b4   :  { %1044 = vtanh.f32 %v345_v37 }
 0x4b5   :  { %v339_v39 = vpop.permute.xlu1 %338 }
 0x4b6   :  { %v347_v40 = vadd.f32 %v339_v39, %v1255_v38 }
 0x4b8   :  { %1046 = vtanh.f32 %v347_v40 }
 0x4b9   :  { %v359_v41 = vpop.permute.xlu1 %358 }
 0x4be   :  { %v1045_v43 = vpop.eup %1044 }
 0x4bf   :  { %v363_v44 = vmul.f32 %v1045_v43, %v359_v41 }
 0x4c1   :  { %372 = vrot.lane.b32.xlu1 %v363_v44, %s1150_s1 }
 0x4c2   :  { %v1047_v45 = vpop.eup %1046 }
 0x4c3   :  { %v365_v46 = vmul.f32 %v1047_v45, %v359_v41 }
 0x4c4   :  { %v371_v47 = vpop.permute.xlu0 %370 }
 0x4c5   :  { %376 = vrot.lane.b32.xlu1 %v365_v46, %s1150_s1  ;;  %v382_v48 = vsel %vm207_vm2, %v371_v47, 0.0 }
 0x4c6   :  { %383 = vadd.xlane.f32.xlu0 %v382_v48 }
 0x4c8   :  { %v375_v49 = vpop.permute.xlu0 %374 }
 0x4c9   :  { %v388_v50 = vsel %vm207_vm2, %v375_v49, 0.0 }
 0x4ca   :  { %389 = vadd.xlane.f32.xlu0 %v388_v50 }
 0x533   :  { %v373_v51 = vpop.permute.xlu1 %372 }
 0x534   :  { %v385_v52 = vsel %vm207_vm2, %v373_v51, 0.0 }
 0x535   :  { %386 = vadd.xlane.f32.xlu1 %v385_v52 }
 0x537   :  { %v377_v53 = vpop.permute.xlu1 %376 }
 0x538   :  { %v391_v54 = vsel %vm207_vm2, %v377_v53, 0.0 }
 0x539   :  { %392 = vadd.xlane.f32.xlu0 %v391_v54 }
 0x546   :  { %464 = vbcast.lane.b32.xlu1 %v453_v55, 328 }
 0x54f   :  { %460 = vbcast.lane.b32.xlu0 %v453_v55, 320 }
 0x553   :  { %472 = vbcast.lane.b32.xlu0 %v457_v56, 328  ;;  %v384_v59 = vpop.xlane.xlu0 %383 }
 0x554   :  { %v403_v26 = vrot.slane %v384_v59, %v1277_v23 }
 0x557   :  { %v390_v62 = vpop.xlane.xlu0 %389 }
 0x558   :  { %v414_v1 = vrot.slane %v390_v62, %v1277_v23 }
 0x5c2   :  { %v387_v63 = vpop.xlane.xlu1 %386 }
 0x5c3   :  { %v408_v2 = vrot.slane %v387_v63, %v1273_v61 }
 0x5c5   :  { %v410_v6 = vsel %vm409_vm3, %v408_v2, %v403_v26  ;;  %v45_v2 = vld [vmem:[#allocation5 + $0x38] sm:$0xff] }
 0x5c6   :  { %v393_v3 = vpop.xlane.xlu0 %392  ;;  %v465_v10 = vpop.permute.xlu1 %464 }
 0x5c7   :  { %v418_v4 = vrot.slane %v393_v3, %v1273_v61 }
 0x5c9   :  { %v419_v7 = vsel %vm409_vm3, %v418_v4, %v414_v1 }
 0x5ca   :  { %v421_v8 = vsel %vm420_vm4, %v419_v7, %v410_v6  ;;  %v461_v28 = vpop.permute.xlu0 %460 }
 0x5cb   :  { %v424_v17 = vsel %vm423_vm5, %v421_v8, -inf }
 0x5cc   :  { %425 = vmax.xlane.f32.xlu1 %v424_v17 }
 0x5ce   :  { %v473_v39 = vpop.permute.xlu0 %472 }
 0x5dd   :  { %468 = vbcast.lane.b32.xlu1 %v457_v56, 320 }
 0x659   :  { %v426_v11 = vpop.xlane.xlu1 %425 }
 0x65a   :  { %v431_v12 = vrot.slane %v426_v11, %v1220_v42  ;;  %v435_v13 = vrot.slane %v426_v11, %v1215_v36  ;;  %v41_v11 = vld [vmem:[#allocation5 + $0x8] sm:$0xff] }
 0x65c   :  { %v438_v14 = vsub.f32 %v384_v59, %v431_v12  ;;  %v439_v15 = vsub.f32 %v387_v63, %v431_v12  ;;  %v440_v16 = vsub.f32 %v390_v62, %v435_v13  ;;  %v441_v18 = vsub.f32 %v393_v3, %v435_v13  ;;  %v47_v3 = vld [vmem:[#allocation5 + $0x48] sm:$0xff]  ;;  %v43_v12 = vld [vmem:[#allocation5 + $0x18] sm:$0xff] }
 0x65d   :  { %v469_v29 = vpop.permute.xlu1 %468  ;;  %v995_v63 = vpack.c.bf16 %v1255_v38, %v1246_v24  ;;  %v993_v26 = vpack.c.bf16 %v47_v3, %v45_v2  ;;  %v989_v13 = vpack.c.bf16 %v43_v12, %v41_v11 }
 0x65e   :  { %v442_v20 = vmul.f32 1.442695, %v438_v14  ;;  %v444_v21 = vmul.f32 1.442695, %v439_v15  ;;  %v446_v22 = vmul.f32 1.442695, %v440_v16  ;;  %v991_v14 = vpack.c.bf16 %v1252_v34, %v1242_v19 }
 0x65f   :  { %v448_v25 = vmul.f32 1.442695, %v441_v18  ;;  %994 = vmatprep.subr.bf16.mxu1 %v993_v26  ;;  %990 = vmatprep.subr.bf16.mxu0 %v989_v13 }
 0x660   :  { %1048 = vpow2.f32 %v442_v20  ;;  %996 = vmatpush1.bf16.msra.mxu1 %v995_v63  ;;  %992 = vmatpush1.bf16.msra.mxu0 %v991_v14 }
 0x661   :  { %1050 = vpow2.f32 %v444_v21  ;;  %997 = vmatprep.subr.bf16.mxu0 %v1151_v57 }
 0x662   :  { %1052 = vpow2.f32 %v446_v22 }
 0x663   :  { %1054 = vpow2.f32 %v448_v25 }
 0x66a   :  { %v1049_v27 = vpop.eup %1048 }
 0x66b   :  { %v1051_v30 = vpop.eup %1050  ;;  %v478_v31 = vmul.f32 %v1049_v27, %v461_v28  ;;  %v753_v28 = vld [vmem:[#allocation2 + $0xc0] sm:$0xff] }
 0x66c   :  { %v1053_v32 = vpop.eup %1052  ;;  %v479_v35 = vmul.f32 %v1051_v30, %v465_v10  ;;  %v755_v30 = vld [vmem:[#allocation2 + $0xe0] sm:$0xff] }
 0x66d   :  { %v480_v33 = vmul.f32 %v1053_v32, %v469_v29  ;;  %485 = vperm.xlu1 %1030, %v478_v31   ;;  %v1055_v37 = vpop.eup %1054  ;;  %v754_v29 = vld [vmem:[#allocation2 + $0xd0] sm:$0xff] }
 0x66e   :  { %v481_v40 = vmul.f32 %v1055_v37, %v473_v39  ;;  %v756_v32 = vld [vmem:[#allocation2 + $0xf0] sm:$0xff] }
 0x66f   :  { %488 = vperm.xlu0 %1031, %v480_v33   ;;  %v760_v39 = vld [vmem:[#allocation2 + $0x130] sm:$0xff] }
 0x671   :  { %507 = vperm.xlu1 %1030, %v479_v35  }
 0x675   :  { %510 = vperm.xlu1 %1030, %v481_v40  }
 0x6ec   :  { %v486_v41 = vpop.permute.xlu1 %485 }
 0x6ed   :  { %v493_v43 = vrot.slane %v486_v41, %v1277_v23  ;;  %v762_v41 = vld [vmem:[#allocation2 + $0x150] sm:$0xff] }
 0x6ee   :  { %v489_v44 = vpop.permute.xlu0 %488 }
 0x6ef   :  { %v497_v45 = vrot.slane %v489_v44, %v1277_v23  ;;  %v763_v44 = vld [vmem:[#allocation2 + $0x160] sm:$0xff] }
 0x6f0   :  { %v508_v46 = vpop.permute.xlu1 %507 }
 0x6f1   :  { %v498_v47 = vsel %vm420_vm4, %v497_v45, %v493_v43  ;;  %v515_v50 = vrot.slane %v508_v46, %v1277_v23  ;;  %v764_v45 = vld [vmem:[#allocation2 + $0x170] sm:$0xff] }
 0x6f2   :  { %v501_v48 = vsel %vm500_vm6, %v498_v47, 0.0  ;;  %v1013_v46 = vpack.c.bf16 %v764_v45, %v763_v44 }
 0x6f3   :  { %502 = vadd.xlane.f32.xlu0 %v501_v48 }
 0x6f4   :  { %v511_v49 = vpop.permute.xlu1 %510 }
 0x6f5   :  { %v519_v51 = vrot.slane %v511_v49, %v1277_v23 }
 0x6f7   :  { %v520_v52 = vsel %vm420_vm4, %v519_v51, %v515_v50 }
 0x6f8   :  { %v522_v53 = vsel %vm500_vm6, %v520_v52, 0.0 }
 0x6f9   :  { %523 = vadd.xlane.f32.xlu1 %v522_v53 }
 0x780   :  { %v503_v54 = vpop.xlane.xlu0 %502 }
 0x786   :  { %v524_v55 = vpop.xlane.xlu1 %523 }
 0x787   :  { %v526_v56 = vsel %vm525_vm7, %v503_v54, %v524_v55 }
 0x788   :  { %v527_v59 = vmax.f32 %v526_v56, 1e-30 }
 0x78a   :  { %v543_v60 = vrot.slane %v527_v59, %v1215_v36  ;;  %v532_v62 = vrot.slane %v527_v59, %v1220_v42  ;;  %v765_v59 = vld [vmem:[#allocation2 + $0x1a2] ss:$0 sm:$0xff] }
 0x78c   :  { %549 = vbcast.lane.b32.xlu1 %v543_v60, 264  ;;  %545 = vbcast.lane.b32.xlu0 %v543_v60, 256 }
 0x790   :  { %538 = vbcast.lane.b32.xlu1 %v532_v62, 264  ;;  %534 = vbcast.lane.b32.xlu0 %v532_v62, 256 }
 0x7fe   :  { %v550_v1 = vpop.permute.xlu1 %549  ;;  %v546_v4 = vpop.permute.xlu0 %545 }
 0x7ff   :  { %1056 = vrcp.f32 %v550_v1 }
 0x800   :  { %1058 = vrcp.f32 %v546_v4 }
 0x802   :  { %v539_v6 = vpop.permute.xlu1 %538  ;;  %v535_v36 = vpop.permute.xlu0 %534 }
 0x803   :  { %1060 = vrcp.f32 %v539_v6 }
 0x804   :  { %1062 = vrcp.f32 %v535_v36 }
 0x809   :  { %v1057_v7 = vpop.eup %1056 }
 0x80a   :  { %v1059_v42 = vpop.eup %1058  ;;  %v562_v8 = vmul.f32 %v1057_v7, %v481_v40 }
 0x80b   :  { %v560_v17 = vmul.f32 %v1059_v42, %v480_v33  ;;  %v1001_v33 = vpack.c.bf16 %v756_v32, %v755_v30 }
 0x80c   :  { %660 = vperm.xlu1 %1030, %v562_v8  }
 0x80d   :  { %v1061_v9 = vpop.eup %1060  ;;  %657 = vperm.xlu0 %1031, %v560_v17  }
 0x80e   :  { %v1063_v24 = vpop.eup %1062  ;;  %v558_v38 = vmul.f32 %v1061_v9, %v479_v35  ;;  %v758_v35 = vld [vmem:[#allocation2 + $0x110] sm:$0xff] }
 0x80f   :  { %v556_v10 = vmul.f32 %v1063_v24, %v478_v31  ;;  %v998_v31 = vpack.c.bf16 %v754_v29, %v753_v28 }
 0x810   :  { %569 = vperm.xlu1 %1030, %v558_v38  }
 0x811   :  { %566 = vperm.xlu0 %1031, %v556_v10  }
 0x88b   :  { %v661_v15 = vpop.permute.xlu1 %660 }
 0x88c   :  { %v669_v16 = vrot.slane %v661_v15, %v1273_v61  ;;  %v658_v18 = vpop.permute.xlu0 %657 }
 0x88d   :  { %v665_v20 = vrot.slane %v658_v18, %v1277_v23 }
 0x88f   :  { %v670_v21 = vsel %vm409_vm3, %v669_v16, %v665_v20  ;;  %v570_v22 = vpop.permute.xlu1 %569 }
 0x890   :  { %v578_v25 = vrot.slane %v570_v22, %v1273_v61  ;;  %908 = vmatmul.mubr.msk.f32.vlgmr.msra.gmra.mrb[4].mxu1 %vm580_vm8, %v670_v21  ;;  %v567_v27 = vpop.permute.xlu0 %566  ;;  %v757_v61 = vld [vmem:[#allocation2 + $0x100] sm:$0xff] }
 0x891   :  { %v574_v19 = vrot.slane %v567_v27, %v1277_v23  ;;  %v1004_v37 = vpack.c.bf16 %v758_v35, %v757_v61  ;;  %v759_v23 = vld [vmem:[#allocation2 + $0x120] sm:$0xff] }
 0x892   :  { %v1007_v40 = vpack.c.bf16 %v760_v39, %v759_v23 }
 0x893   :  { %v579_v34 = vsel %vm409_vm3, %v578_v25, %v574_v19 }
 0x894   :  { %907 = vmatmul.mubr.msk.f32.vlgmr.msra.gmra.mrb[0].mxu0 %vm580_vm8, %v579_v34 }
 0x895   :  { %964 = vmatprep.mubr.msk.f32.mxu0 %vm1152_vm1, %v1148_v0  ;;  %999 = vmatpush3.bf16.msra.mxu0 %v998_v31  ;;  %v761_v0 = vld [vmem:[#allocation2 + $0x140] sm:$0xff] }
 0x896   :  { %1000 = vmatprep.subr.bf16.mxu0 %v1151_v57  ;;  %v1010_v43 = vpack.c.bf16 %v762_v41, %v761_v0 }
 0x899   :  { %1002 = vmatpush3.bf16.msra.mxu0 %v1001_v33 }
 0x89a   :  { %1003 = vmatprep.subr.bf16.mxu0 %v1151_v57 }
 0x89d   :  { %1005 = vmatpush3.bf16.msra.mxu0 %v1004_v37 }
 0x89e   :  { %1006 = vmatprep.subr.bf16.mxu0 %v1151_v57 }
 0x8a1   :  { %1008 = vmatpush3.bf16.msra.mxu0 %v1007_v40 }
 0x8a2   :  { %1009 = vmatprep.subr.bf16.mxu0 %v1151_v57 }
 0x8a5   :  { %1011 = vmatpush3.bf16.msra.mxu0 %v1010_v43 }
 0x8a6   :  { %1012 = vmatprep.subr.bf16.mxu0 %v1151_v57  ;;  %v1156_v57 = vmov 40  }
 0x8a7   :  { %1033 = vset.pattern.permute.xlu1 %v1156_v57  ;;  %1032 = vset.pattern.permute.xlu0 %v1156_v57 }
 0x8a9   :  { %1014 = vmatpush3.bf16.msra.mxu0 %v1013_v46 }
 0x963   :  { %v739_v47 = vpop.f32.mrb[4].mxu1 }
 0x964   :  { %v741_v48 = vpop.f32.mrb[5].mxu1  ;;  %v747_v49 = vrot.slane %v739_v47, 7 }
 0x965   :  { %v874_v50 = vrot.slane %v741_v48, 7 }
 0x967   :  { %v649_v51 = vpop.f32.mrb[0].mxu0 }
 0x968   :  { %v651_v52 = vpop.f32.mrb[1].mxu0  ;;  %v748_v53 = vsel %vm420_vm4, %v747_v49, %v649_v51 }
 0x969   :  { %749 = vrot.lane.b32.xlu0 %v748_v53, %s1155_s7  ;;  %v875_v54 = vsel %vm420_vm4, %v874_v50, %v651_v52 }
 0x9db   :  { %v750_v55 = vpop.permute.xlu0 %749 }
 0x9dc   :  { %v752_v56 = vsel %vm207_vm2, %v1228_v5, %v750_v55 }
 0x9dd   :  { %965 = vmatmul.mubr.msk.f32.vlgmr.msra.gmra.mrb[2].mxu0 %vm766_vm9, %v752_v56 }
 0xab0   :  { %v836_v60 = vpop.f32.mrb[2].mxu0 }
 0xab1   :  { %v837_v62 = vadd.f32 %v836_v60, %v765_v59  ;;  %v966_v63 = vpop.f32.mrb[3].mxu0 }
 0xab3   :  { %v910_v2 = vmul.f32 -1.442695, %v837_v62  ;;  %v841_v3 = vsel %vm840_vm10, %v837_v62, -1e+30 }
 0xab4   :  { %v843_v26 = vsel %vm842_vm11, %v841_v3, -inf }
 0xab5   :  { %1064 = vpow2.f32 %v910_v2  ;;  %844 = vmax.xlane.f32.xlu1 %v843_v26 }
 0xabf   :  { %v1065_v1 = vpop.eup %1064 }
 0xac0   :  { %v857_v4 = vadd.f32 1.0, %v1065_v1 }
 0xac2   :  { %1066 = vrcp.f32 %v857_v4 }
 0xacc   :  { %v1067_v5 = vpop.eup %1066 }
 0xacd   :  { %v860_v6 = vsub.f32 1.0, %v1067_v5 }
 0xacf   :  { %869 = vperm.xlu1 %1033, %v860_v6  }
 0xb42   :  { %v845_v36 = vpop.xlane.xlu1 %844 }
 0xb43   :  { %v846_v7 = vsub.f32 %v841_v3, %v845_v36 }
 0xb45   :  { %v847_v42 = vmul.f32 1.442695, %v846_v7 }
 0xb47   :  { %1068 = vpow2.f32 %v847_v42 }
 0xb4e   :  { %v870_v38 = vpop.permute.xlu1 %869 }
 0xb4f   :  { %v877_v14 = vmul.f32 %v875_v54, %v870_v38 }
 0xb51   :  { %v1069_v8 = vpop.eup %1068 }
 0xb52   :  { %v849_v17 = vsel %vm842_vm11, %v1069_v8, 0.0 }
 0xb53   :  { %850 = vadd.xlane.f32.xlu0 %v849_v17 }
 0xb69   :  { %863 = vperm.xlu0 %1032, %v1067_v5  }
 0xbe0   :  { %v851_v9 = vpop.xlane.xlu0 %850 }
 0xbe1   :  { %1070 = vrcp.f32 %v851_v9 }
 0xbe8   :  { %v864_v24 = vpop.permute.xlu0 %863 }
 0xbe9   :  { %v881_v10 = vsel %vm880_vm12, %v864_v24, %v837_v62 }
 0xbea   :  { %v883_v11 = vsel %vm882_vm13, %v870_v38, %v881_v10 }
 0xbeb   :  { %v1071_v12 = vpop.eup %1070  ;;  %885 = vst [vmem:[#allocation7 + $0x2] sm:$0x3] %v883_v11 }
 0xbec   :  { %v853_v13 = vmul.f32 %v1071_v12, %v1069_v8 }
 0xbee   :  { %v866_v15 = vmul.f32 %v864_v24, %v853_v13 }
 0xbf0   :  { %v878_v16 = vadd.f32 %v877_v14, %v866_v15 }
 0xbf2   :  { %879 = vst [vmem:[#allocation7] sm:$0x3] %v878_v16 }
 0xbf3   :  { %1127 = shalt.err (!%p1124_p6)
}
 0xbf4   :  { %s1128_s13 = scalar_lea.hbm %s1341_s2, 64 }
 0xbf5   :  { %p1129_p7 = scmp.ne.s32.totalorder %s1341_s2, %s1128_s13  ;;  %p1132_p8 = scmp.lt.u32.totalorder %s1128_s13, %s1341_s2 }
 0xbf7   :  { %p1134_p9 = pnand %p1132_p8, %p1129_p7 }
 0xbf9   :  { %1137 = shalt.err (!%p1134_p9)
}
 0xbfa   :  { %s1158_s18 = smov 2  }
 0xbfb   :  { %897 = dma.vmem_to_hbm [thread:$0]  %s892_s9, 64, %s1341_s2, [#allocation4], %s1155_s7, %s1155_s7, %s1158_s18  }
 0xbfc   :  { %1142 = dma.done.wait [#allocation4], 64  }
 0xbfd   :  { %1143 = vsyncadd [#allocation4], 4294967232 }
 0xbfe   :  { %901 = vsyncpa [#allocation3], 1 }
 0xbff   :  { %902 = vsyncpa [#allocation6], 1 }
 0xc00   :  { %903 = vsyncpa [#allocation4], 1 }

</bundles_post_ra>
